<compile_context>
chip_gen: v7x
topology: tpu7x:2x2x1
jax: 0.10.0
libtpu: 0.0.40
codegen_flags: <defaults>
</compile_context>

<pallas_src>
import jax
import jax.numpy as jnp
from jax.experimental import pallas as pl
from jax.experimental.pallas import tpu as pltpu


def _round_up(x: int, m: int) -> int:
    return ((x + m - 1) // m) * m


def _vmem_limit_bytes() -> int:
    """Pick a scoped-VMEM budget from the physical capacity (with headroom)."""
    try:
        cap = getattr(pltpu.get_tpu_info(), "vmem_capacity_bytes", None)
    except Exception:
        cap = None
    if cap is not None and cap >= 128 * 1024 * 1024:
        return 100 * 1024 * 1024          # v5e / v6e: 128 MiB physical
    return 48 * 1024 * 1024               # v7x (64 MiB physical) / unknown


def _linear_kernel_nok(x_ref, w_ref, b_ref, o_ref):
    # x_ref: (tm, K), w_ref: (K, tn) [pre-transposed], b_ref: (1, tn).
    acc = jnp.dot(x_ref[...], w_ref[...], preferred_element_type=jnp.float32)
    o_ref[...] = (acc + b_ref[...]).astype(o_ref.dtype)


def _linear_kernel_ktiled(x_ref, w_ref, b_ref, o_ref, acc_ref):
    # 3-D grid (i, j, k): K is the reduction axis, accumulated in f32 VMEM.
    k = pl.program_id(2)

    @pl.when(k == 0)
    def _init():
        acc_ref[...] = jnp.zeros_like(acc_ref)

    acc_ref[...] += jnp.dot(x_ref[...], w_ref[...],
                            preferred_element_type=jnp.float32)

    @pl.when(k == pl.num_programs(2) - 1)
    def _finalize():
        o_ref[...] = (acc_ref[...] + b_ref[...]).astype(o_ref.dtype)


def linear_forward(x, weight, bias, *, tm=512, tn=512, tk=1024,
                   k_tile_threshold=4096, use_bf16=False):
    """Equivalent of torch.nn.Linear forward.

    x:      [M, K] activations
    weight: [N, K] (PyTorch [out_features, in_features] layout)
    bias:   [N]
    returns [M, N] = x @ weight.T + bias
    """
    M, K = x.shape
    N, K2 = weight.shape
    assert K == K2, "weight in_features must match x feature dim"
    out_dtype = x.dtype

    # Pre-transpose the weight ONCE ([N,K] -> [K,N]): one cheap HBM pass,
    # amortized over every M tile; removes the per-step XLU transpose that a
    # dim-1/dim-1 contraction would imply inside the kernel.
    w_t = weight.T
    b2d = bias.reshape(1, N)

    if use_bf16:
        # Halves HBM traffic / hits native MXU bf16 rate; f32 accumulation.
        x = x.astype(jnp.bfloat16)
        w_t = w_t.astype(jnp.bfloat16)

    # ---- tiny-shape short-circuit (the linearRegression class of shapes) ----
    # Entirely launch/DMA-overhead bound: use one whole-array block, no grid,
    # no N-padding, no output slicing.
    if M <= 128 and N <= 128 and K <= 512:
        return pl.pallas_call(
            _linear_kernel_nok,
            out_shape=jax.ShapeDtypeStruct((M, N), out_dtype),
        )(x, w_t, b2d)

    vmem_limit = _vmem_limit_bytes()

    # ---- tile selection (no M/N padding: Pallas masks partial edge blocks) --
    tm = M if M <= tm else tm            # tm is a multiple of 8 when tiling
    tn = N if N <= tn else tn            # tn is a multiple of 128 when tiling
    nm = pl.cdiv(M, tm)
    nn = pl.cdiv(N, tn)

    # Keep both TensorCores busy on 2-TC chips: never leave a (1,1) grid when
    # one of the parallel axes can be split.
    if nm == 1 and nn == 1:
        if M >= 16 and M >= N:
            tm = _round_up(-(-M // 2), 8)
        elif N >= 256:
            tn = _round_up(-(-N // 2), 128)
        nm = pl.cdiv(M, tm)
        nn = pl.cdiv(N, tn)

    if K <= k_tile_threshold:
        # ---- 2-D grid, K resident per tile: no accumulator, no pl.when. ----
        # Pick the reuse direction that minimizes re-streamed HBM traffic:
        # the operand indexed by the *inner* grid axis is re-fetched once per
        # outer step.
        x_resident_cost = nm * N * K      # weight re-streamed nm times
        w_resident_cost = nn * M * K      # x re-streamed nn times
        if x_resident_cost <= w_resident_cost:
            grid = (nm, nn)
            x_map = lambda i, j: (i, 0)
            w_map = lambda i, j: (0, j)
            b_map = lambda i, j: (0, j)
            o_map = lambda i, j: (i, j)
        else:
            grid = (nn, nm)
            x_map = lambda j, i: (i, 0)
            w_map = lambda j, i: (0, j)
            b_map = lambda j, i: (0, j)
            o_map = lambda j, i: (i, j)
        return pl.pallas_call(
            _linear_kernel_nok,
            out_shape=jax.ShapeDtypeStruct((M, N), out_dtype),
            grid=grid,
            in_specs=[
                pl.BlockSpec((tm, K), x_map),
                pl.BlockSpec((K, tn), w_map),
                pl.BlockSpec((1, tn), b_map),
            ],
            out_specs=pl.BlockSpec((tm, tn), o_map),
            compiler_params=pltpu.CompilerParams(
                dimension_semantics=("parallel", "parallel"),
                vmem_limit_bytes=vmem_limit),
        )(x, w_t, b2d)

    # ---- 3-D grid with K reduction axis last + f32 VMEM accumulator. -------
    # K is the contracted dim: its tail MUST be zero-padded (garbage in padded
    # K columns would corrupt real outputs, unlike M/N edge blocks).
    Kp = _round_up(K, tk)
    if Kp != K:
        x = jnp.pad(x, ((0, 0), (0, Kp - K)))
        w_t = jnp.pad(w_t, ((0, Kp - K), (0, 0)))
    nk = Kp // tk
    return pl.pallas_call(
        _linear_kernel_ktiled,
        out_shape=jax.ShapeDtypeStruct((M, N), out_dtype),
        grid=(nm, nn, nk),
        in_specs=[
            pl.BlockSpec((tm, tk), lambda i, j, k: (i, k)),
            pl.BlockSpec((tk, tn), lambda i, j, k: (k, j)),
            pl.BlockSpec((1, tn), lambda i, j, k: (0, j)),
        ],
        out_specs=pl.BlockSpec((tm, tn), lambda i, j, k: (i, j)),
        scratch_shapes=[pltpu.VMEM((tm, tn), jnp.float32)],
        compiler_params=pltpu.CompilerParams(
            dimension_semantics=("parallel", "parallel", "arbitrary"),
            vmem_limit_bytes=vmem_limit),
    )(x, w_t, b2d)


if __name__ == "__main__":
    # ---- 1) Shapes implied by the module: inputSize=32, outputSize=16, batch=8.
    batch, input_size, output_size = 8, 32, 16
    key = jax.random.PRNGKey(0)
    kx, kw, kb = jax.random.split(key, 3)

    # Deterministic init mimicking torch.nn.Linear uniform(-1/sqrt(in), 1/sqrt(in)).
    bound = 1.0 / jnp.sqrt(jnp.float32(input_size))
    weight = jax.random.uniform(kw, (output_size, input_size),
                                minval=-bound, maxval=bound, dtype=jnp.float32)
    bias = jax.random.uniform(kb, (output_size,),
                              minval=-bound, maxval=bound, dtype=jnp.float32)
    x = jax.random.normal(kx, (batch, input_size), dtype=jnp.float32)

    out = jax.block_until_ready(linear_forward(x, weight, bias))
    ref = x @ weight.T + bias
    assert out.shape == (batch, output_size)
    # MXU f32 matmul may run as multi-pass bf16 at default precision -> use a
    # tolerance that is generous for rounding but far below any structural bug.
    assert jnp.allclose(out, ref, atol=3e-2, rtol=1e-2), \
        float(jnp.max(jnp.abs(out - ref)))

    # ---- 2) Tiled 2-D path: partial M edge block, no M/N padding, TC split.
    M2, K2, N2 = 300, 160, 200
    k2x, k2w, k2b = jax.random.split(jax.random.PRNGKey(1), 3)
    x2 = jax.random.normal(k2x, (M2, K2), dtype=jnp.float32)
    w2 = jax.random.normal(k2w, (N2, K2), dtype=jnp.float32) * 0.05
    b2 = jax.random.normal(k2b, (N2,), dtype=jnp.float32)
    out2 = jax.block_until_ready(linear_forward(x2, w2, b2))
    ref2 = x2 @ w2.T + b2
    assert out2.shape == (M2, N2)
    assert jnp.allclose(out2, ref2, atol=3e-2, rtol=1e-2), \
        float(jnp.max(jnp.abs(out2 - ref2)))

    # ---- 3) K-tiled (3-D grid) accumulator path, exercised at small scale.
    M3, K3, N3 = 64, 320, 256
    k3x, k3w, k3b = jax.random.split(jax.random.PRNGKey(2), 3)
    x3 = jax.random.normal(k3x, (M3, K3), dtype=jnp.float32)
    w3 = jax.random.normal(k3w, (N3, K3), dtype=jnp.float32) * 0.05
    b3 = jax.random.normal(k3b, (N3,), dtype=jnp.float32)
    out3 = jax.block_until_ready(
        linear_forward(x3, w3, b3, tk=128, k_tile_threshold=256))
    ref3 = x3 @ w3.T + b3
    assert out3.shape == (M3, N3)
    assert jnp.allclose(out3, ref3, atol=3e-2, rtol=1e-2), \
        float(jnp.max(jnp.abs(out3 - ref3)))

    print("KERNEL_OK")
</pallas_src>

<mosaic_0001>
module attributes {stable_mosaic.version = 11 : i64} {
  func.func @_linear_kernel_nok(%arg0: memref<8x32xf32, #tpu.memory_space<vmem>>, %arg1: memref<32x16xf32, #tpu.memory_space<vmem>>, %arg2: memref<1x16xf32, #tpu.memory_space<vmem>>, %arg3: memref<8x16xf32, #tpu.memory_space<vmem>>) attributes {dimension_semantics = [], scalar_prefetch = 0 : i64, scratch_operands = 0 : i64, tpu.core_type = #tpu.core_type<tc>} {
    %c0 = arith.constant 0 : index
    %c0_0 = arith.constant 0 : index
    %0 = vector.load %arg0[%c0, %c0_0] : memref<8x32xf32, #tpu.memory_space<vmem>>, vector<8x32xf32>
    %c0_1 = arith.constant 0 : index
    %c0_2 = arith.constant 0 : index
    %1 = vector.load %arg1[%c0_1, %c0_2] : memref<32x16xf32, #tpu.memory_space<vmem>>, vector<32x16xf32>
    %cst = arith.constant dense<0.000000e+00> : vector<8x16xf32>
    %2 = tpu.matmul %0, %1, %cst {dimension_numbers = #tpu.dot_dimension_numbers<[1], [0], [0], [1], [0, 0, 1, 1], [], []>} : vector<8x32xf32>, vector<32x16xf32>, vector<8x16xf32> -> vector<8x16xf32>
    %c0_3 = arith.constant 0 : index
    %c0_4 = arith.constant 0 : index
    %3 = vector.load %arg2[%c0_3, %c0_4] : memref<1x16xf32, #tpu.memory_space<vmem>>, vector<1x16xf32>
    %4 = vector.broadcast %3 : vector<1x16xf32> to vector<8x16xf32>
    %5 = arith.addf %2, %4 : vector<8x16xf32>
    %c0_5 = arith.constant 0 : index
    %c0_6 = arith.constant 0 : index
    %6 = vector.load %arg3[%c0_5, %c0_6] : memref<8x16xf32, #tpu.memory_space<vmem>>, vector<8x16xf32>
    tpu.vector_store %arg3[%c0_5, %c0_6], %5 {strides = array<i32>} : memref<8x16xf32, #tpu.memory_space<vmem>>, vector<8x16xf32>,
    return
  }
}

</mosaic_0001>

<bundles_post_ra>
// kernel: tpu_custom_call.1
= control target key start
LH: loop header
LB: loop body
LE: loop exit
PB: predicated region body
PF: predicated region fallthrough
CT: control target
= control target key end

     0   :  { %v169_v3 = vmov 0.0|0.0   ;;  %vm170_vm0 = vmmov 0   ;;  %v171_v6 = vmov 0.0   ;;  %s223_s0 = inlined_call_operand.vmem [shape: f32[8,32], index: 0, kind: input, shape index: {}]   ;;  %s224_s1 = inlined_call_operand.vmem [shape: f32[32,16], index: 1, kind: input, shape index: {}]   ;;  %s225_s2 = inlined_call_operand.vmem [shape: f32[1,16], index: 2, kind: input, shape index: {}]   ;;  %s226_s3 = inlined_call_operand.hbm [shape: f32[8,16], index: 3, kind: output, shape index: {}]  }
   0x1   :  { %v16_v0 = vld [vmem:[%s224_s1] sm:$0xff]  ;;  %v17_v1 = vld [vmem:[%s224_s1 + $0x8] sm:$0xff]  ;;  %v18_v2 = vld [vmem:[%s224_s1 + $0x10] sm:$0xff]  ;;  %135 = vmatprep.subr.bf16.mxu0 %v169_v3  ;;  %132 = vmatprep.mubr.msk.f32.mxu0 %vm170_vm0, %v171_v6 }
   0x2   :  { %v136_v4 = vpack.c.bf16 %v17_v1, %v16_v0  ;;  %v19_v5 = vld [vmem:[%s224_s1 + $0x18] sm:$0xff] }
   0x3   :  { %8 = vsyncpa [#allocation3], 0  ;;  %v139_v7 = vpack.c.bf16 %v19_v5, %v18_v2  ;;  %v15_v8 = vld [vmem:[%s223_s0] sm:$0xff]  ;;  %vm27_vm1 = vcmask 261120   ;;  %s172_s24 = smov [#allocation2]   ;;  %vm101_vm2 = vcmask 130048  }
   0x4   :  { %137 = vmatpush3.bf16.msra.mxu0 %v136_v4  ;;  %v117_v9 = vld [vmem:[%s225_s2] ss:$0 sm:$0xff]  ;;  %s109_s1 = sshll.u32 %s172_s24, 4  ;;  %s110_s1 = int_to_ptr.vmem [resolvable:$true] %s109_s1 }
   0x5   :  { %138 = vmatprep.subr.bf16.mxu0 %v169_v3  ;;  %s145_s25 = scalar_lea.vmem %s110_s1, 128  ;;  %p150_p1 = scmp.lt.s32.totalorder %s110_s1, %s110_s1 }
   0x6   :  { %p146_p0 = scmp.ne.s32.totalorder %s110_s1, %s145_s25  ;;  %p151_p2 = scmp.lt.s32.totalorder %s145_s25, %s145_s25 }
   0x8   :  { %140 = vmatpush3.bf16.msra.mxu0 %v139_v7  ;;  %p152_p3 = por %p151_p2, %p150_p1 }
   0xa   :  { %p153_p4 = pnand %p152_p3, %p146_p0 }
   0xb   :  { %133 = vmatmul.mubr.msk.f32.vlgmr.msra.gmra.mrb[0].mxu0 %vm27_vm1, %v15_v8 }
  0xde   :  { %v97_v10 = vpop.f32.mrb[0].mxu0 }
  0xdf   :  { %v98_v11 = vadd.f32 %v117_v9, %v97_v10  ;;  %v134_v12 = vpop.f32.mrb[1].mxu0 }
  0xe1   :  { %102 = vst.msk [vmem:[#allocation2] sm:$0xff] %vm101_vm2, %v98_v11 }
  0xe2   :  { %156 = shalt.err (!%p153_p4)
}
  0xe3   :  { %s157_s27 = scalar_lea.hbm %s226_s3, 128 }
  0xe4   :  { %p158_p5 = scmp.ne.s32.totalorder %s226_s3, %s157_s27  ;;  %p161_p6 = scmp.lt.u32.totalorder %s157_s27, %s226_s3 }
  0xe6   :  { %p163_p7 = pnand %p161_p6, %p158_p5 }
  0xe8   :  { %166 = shalt.err (!%p163_p7)
}
  0xe9   :  { %112 = dma.vmem_to_hbm [thread:$0]  %s110_s1, 128, %s226_s3, [#allocation3]  }
  0xea   :  { %167 = dma.done.wait [#allocation3], 128  }
  0xeb   :  { %168 = vsyncadd [#allocation3], 4294967168 }
  0xec   :  { %116 = vsyncpa [#allocation3], 1 }

</bundles_post_ra>
